<compile_context>
chip_gen: v7x
topology: tpu7x:2x2x1
jax: 0.10.0
libtpu: 0.0.40
codegen_flags: <defaults>
</compile_context>

<pallas_src>
import functools

import jax
import jax.numpy as jnp
from jax.experimental import pallas as pl
from jax.experimental.pallas import tpu as pltpu


def _round_up(x, m):
    return (x + m - 1) // m * m


def _pick_row_tile(hw):
    """Rows of the flattened Ho*Wo axis processed per grid step."""
    # TODO(synk): halve this (512) on v7x (64 MiB VMEM) for very wide backbones.
    if hw <= 1024:
        return hw                      # single tile (== full dim -> legal block)
    t = 1024
    while t >= 128:
        if hw % t == 0:
            return t                   # multiple of 128 -> lane-legal block
        t //= 2
    return hw


# ------------------------------ fused kernel ------------------------------

def _fused_inference_kernel(x_ref, wconv_ref, bconv_ref, whm_ref, bhm_ref,
                            wdh_ref, bdh_ref, hm_ref, pooled_ref, fsum_ref,
                            *, inv_hw):
    # x_ref     : (1, 16*Cin, TR) bf16   channel-major im2col of the input tile
    # wconv_ref : (CP, 16*Cin)    bf16   conv taps (3x3 zero-padded to 4x4), transposed
    # bconv_ref : (CP, 1)         f32
    # whm_ref   : (Jp, CP)        bf16   heatmap head, pre-transposed
    # bhm_ref   : (Jp, 1)         f32
    # wdh_ref   : (CP, PD)        f32    [depth | hand0 | hand1 | 0-pad] pooled heads
    # bdh_ref   : (1, PD)         f32
    # hm_ref    : (1, Jp, TR)     bf16   heatmap tile in its final channel-major layout
    # pooled_ref: (1, 1, PD)      f32    pooled head outputs (lane-dense)
    # fsum_ref  : (CP, 1)         f32    running channel sums of the feature map
    r = pl.program_id(1)

    @pl.when(r == 0)
    def _():
        fsum_ref[...] = jnp.zeros_like(fsum_ref)

    # --- backbone: 3x3 stride-2 conv as ONE channel-major matmul (K = 16*Cin) ---
    feat = jnp.dot(wconv_ref[...], x_ref[0],
                   preferred_element_type=jnp.float32)          # (CP, TR)
    feat = jnp.maximum(feat + bconv_ref[...], 0.0)

    # --- heatmap head: MXU emits the final (J, rows) orientation directly ---
    hm = jnp.dot(whm_ref[...], feat.astype(whm_ref.dtype),
                 preferred_element_type=jnp.float32)            # (Jp, TR)
    hm_ref[0] = (hm + bhm_ref[...]).astype(hm_ref.dtype)

    # --- pooled heads: accumulate channel SUMS (linear heads commute with mean) ---
    fsum_ref[...] += jnp.sum(feat, axis=1, keepdims=True)       # (CP, 1)

    @pl.when(r == pl.num_programs(1) - 1)
    def _():
        pooled = fsum_ref[...] * inv_hw                         # (CP, 1) spatial mean
        # VPU broadcast-multiply + sublane reduce (no skinny matmul / transpose).
        out = jnp.sum(wdh_ref[...] * pooled, axis=0, keepdims=True) + bdh_ref[...]
        lane = jax.lax.broadcasted_iota(jnp.int32, out.shape, 1)
        is_hand = (lane >= 1) & (lane < 3)
        pooled_ref[0] = jnp.where(is_hand, jax.nn.sigmoid(out), out)


# ------------------------------ model forward ------------------------------

def inference_model_forward(params, x_nchw):
    """Equivalent of InferenceModel.forward.

    Returns (joint_heatmap_out [N, J, H/2, W/2] bf16,
             rel_root_depth_out [N, 1] f32,
             hand_type [N, 2] f32).
    """
    N, Cin, H, W = x_nchw.shape
    assert H % 2 == 0 and W % 2 == 0
    Ho, Wo = H // 2, W // 2
    HW = Ho * Wo
    K16 = 16 * Cin

    w_bb = params["w_bb"]                                       # (3, 3, Cin, Cf)
    Cf = w_bb.shape[-1]
    J = params["w_hm"].shape[-1]
    CP = _round_up(Cf, 128)                                     # lane-pad feature chans
    Jp = _round_up(J, 8)
    PD = 128                                                    # pooled-head lanes
    TR = _pick_row_tile(HW)
    R = HW // TR

    # ---- input: padded NHWC -> channel-major im2col over 4x4 / stride-2 windows ----
    xh = jnp.transpose(x_nchw, (0, 2, 3, 1))
    xp = jnp.pad(xh, ((0, 0), (1, 1), (1, 1), (0, 0)))
    slabs = [xp[:, dh:dh + 2 * Ho:2, dw:dw + 2 * Wo:2, :]
             for dh in range(4) for dw in range(4)]             # 16 x (N, Ho, Wo, Cin)
    x_cm = (jnp.stack(slabs, axis=3)                            # (N, Ho, Wo, 16, Cin)
            .reshape(N, HW, K16)
            .transpose(0, 2, 1)                                 # (N, 16*Cin, HW)
            .astype(jnp.bfloat16))

    # ---- conv weights: 3x3 zero-padded to 4x4, flattened to K = 16*Cin, transposed ----
    w_eff = jnp.pad(w_bb, ((0, 1), (0, 1), (0, 0), (0, 0)))     # (4, 4, Cin, Cf)
    wconv = jnp.pad(w_eff.reshape(K16, Cf).T,
                    ((0, CP - Cf), (0, 0))).astype(jnp.bfloat16)          # (CP, K16)
    bconv = jnp.pad(params["b_bb"], (0, CP - Cf)).reshape(CP, 1).astype(jnp.float32)

    # ---- heatmap head, pre-transposed to (Jp, CP) ----
    whm = jnp.pad(params["w_hm"].T, ((0, Jp - J), (0, CP - Cf))).astype(jnp.bfloat16)
    bhm = jnp.pad(params["b_hm"], (0, Jp - J)).reshape(Jp, 1).astype(jnp.float32)

    # ---- pooled heads [depth | hand x2], channel-major, lane-padded ----
    wdh = jnp.concatenate([params["w_d"], params["w_h"]], axis=1)         # (Cf, 3)
    wdh = jnp.pad(wdh, ((0, CP - Cf), (0, PD - 3))).astype(jnp.float32)   # (CP, PD)
    bdh = jnp.concatenate([params["b_d"], params["b_h"]])
    bdh = jnp.pad(bdh, (0, PD - 3)).reshape(1, PD).astype(jnp.float32)

    kernel = functools.partial(_fused_inference_kernel, inv_hw=1.0 / HW)

    # TODO(synk): at toy sizes (HW=64) the heatmap store is 64 lanes (< 128) per step;
    #             realistic spatial sizes give 128+-lane row tiles and lane-dense vst.
    # TODO(synk): pipeline_mode=pl.Buffered(1) on the constant-index weight specs (or a
    #             one-time scratch load) would halve their VMEM duplication on v7x.
    hm, pooled = pl.pallas_call(
        kernel,
        out_shape=(jax.ShapeDtypeStruct((N, Jp, HW), jnp.bfloat16),
                   jax.ShapeDtypeStruct((N, 1, PD), jnp.float32)),
        grid=(N, R),
        in_specs=[
            pl.BlockSpec((1, K16, TR), lambda n, r: (n, 0, r)),
            pl.BlockSpec((CP, K16), lambda n, r: (0, 0)),
            pl.BlockSpec((CP, 1), lambda n, r: (0, 0)),
            pl.BlockSpec((Jp, CP), lambda n, r: (0, 0)),
            pl.BlockSpec((Jp, 1), lambda n, r: (0, 0)),
            pl.BlockSpec((CP, PD), lambda n, r: (0, 0)),
            pl.BlockSpec((1, PD), lambda n, r: (0, 0)),
        ],
        out_specs=(
            pl.BlockSpec((1, Jp, TR), lambda n, r: (n, 0, r)),
            pl.BlockSpec((1, 1, PD), lambda n, r: (n, 0, 0)),
        ),
        scratch_shapes=[pltpu.VMEM((CP, 1), jnp.float32)],
        compiler_params=pltpu.CompilerParams(
            dimension_semantics=("parallel", "arbitrary"),
            vmem_limit_bytes=32 * 1024 * 1024),
    )(x_cm, wconv, bconv, whm, bhm, wdh, bdh)

    joint_heatmap_out = hm[:, :J, :].reshape(N, J, Ho, Wo)      # free reshape
    rel_root_depth_out = pooled[:, 0, 0:1]
    hand_type = pooled[:, 0, 1:3]
    return joint_heatmap_out, rel_root_depth_out, hand_type


# ------------------------------ reference / params ------------------------------

def _reference_forward(params, x_nchw):
    """Pure-JAX f32 reference of the same synthetic backbone + pose_net."""
    N, Cin, H, W = x_nchw.shape
    Ho, Wo = H // 2, W // 2
    x = jnp.transpose(x_nchw, (0, 2, 3, 1))
    xp = jnp.pad(x, ((0, 0), (1, 1), (1, 1), (0, 0)))
    patches = []
    for dh in range(3):
        for dw in range(3):
            patches.append(xp[:, dh:dh + 2 * Ho:2, dw:dw + 2 * Wo:2, :])
    pm = jnp.concatenate(patches, -1).reshape(N * Ho * Wo, 9 * Cin)
    feat = jnp.maximum(pm @ params["w_bb"].reshape(9 * Cin, -1) + params["b_bb"], 0.0)
    Cf = feat.shape[-1]
    hm = feat @ params["w_hm"] + params["b_hm"]
    J = hm.shape[-1]
    heat = jnp.transpose(hm.reshape(N, Ho, Wo, J), (0, 3, 1, 2))
    pooled = feat.reshape(N, Ho * Wo, Cf).mean(1)
    depth = pooled @ params["w_d"] + params["b_d"]
    hand = jax.nn.sigmoid(pooled @ params["w_h"] + params["b_h"])
    return heat, depth, hand


def init_params(key, cin=4, cfeat=32, n_joints=8):
    ks = jax.random.split(key, 8)
    f32 = jnp.float32
    return {
        "w_bb": 0.1 * jax.random.normal(ks[0], (3, 3, cin, cfeat), f32),
        "b_bb": 0.01 * jax.random.normal(ks[1], (cfeat,), f32),
        "w_hm": 0.1 * jax.random.normal(ks[2], (cfeat, n_joints), f32),
        "b_hm": 0.01 * jax.random.normal(ks[3], (n_joints,), f32),
        "w_d": 0.1 * jax.random.normal(ks[4], (cfeat, 1), f32),
        "b_d": 0.01 * jax.random.normal(ks[5], (1,), f32),
        "w_h": 0.1 * jax.random.normal(ks[6], (cfeat, 2), f32),
        "b_h": 0.01 * jax.random.normal(ks[7], (2,), f32),
    }


if __name__ == "__main__":
    # TODO(synk): backbone_net / pose_net are constructor-injected in the original
    # module; small deterministic synthetic versions are instantiated here.
    x = jax.random.normal(jax.random.PRNGKey(0), (2, 4, 16, 16), jnp.float32)
    params = init_params(jax.random.PRNGKey(42), cin=4, cfeat=32, n_joints=8)

    fwd = jax.jit(inference_model_forward)
    joint_heatmap_out, rel_root_depth_out, hand_type = fwd(params, x)
    jax.block_until_ready((joint_heatmap_out, rel_root_depth_out, hand_type))

    assert joint_heatmap_out.shape == (2, 8, 8, 8)
    assert rel_root_depth_out.shape == (2, 1)
    assert hand_type.shape == (2, 2)

    # Tolerant check vs. f32 reference (bf16 MXU operands / bf16 heatmap store).
    ref_hm, ref_depth, ref_hand = _reference_forward(params, x)
    assert jnp.allclose(joint_heatmap_out.astype(jnp.float32), ref_hm,
                        atol=5e-2, rtol=5e-2)
    assert jnp.allclose(rel_root_depth_out, ref_depth, atol=5e-2, rtol=5e-2)
    assert jnp.allclose(hand_type, ref_hand, atol=5e-2, rtol=5e-2)

    print("KERNEL_OK")
</pallas_src>

<mosaic_0001>
module attributes {stable_mosaic.version = 11 : i64} {
  func.func @_fused_inference_kernel(%arg0: i32, %arg1: i32, %arg2: memref<1x64x64xbf16, #tpu.memory_space<vmem>>, %arg3: memref<128x64xbf16, #tpu.memory_space<vmem>>, %arg4: memref<128x1xf32, #tpu.memory_space<vmem>>, %arg5: memref<8x128xbf16, #tpu.memory_space<vmem>>, %arg6: memref<8x1xf32, #tpu.memory_space<vmem>>, %arg7: memref<128x128xf32, #tpu.memory_space<vmem>>, %arg8: memref<1x128xf32, #tpu.memory_space<vmem>>, %arg9: memref<1x8x64xbf16, #tpu.memory_space<vmem>>, %arg10: memref<1x1x128xf32, #tpu.memory_space<vmem>>, %arg11: memref<128x1xf32, #tpu.memory_space<vmem>>) attributes {dimension_semantics = [#tpu.dimension_semantics<parallel>, #tpu.dimension_semantics<arbitrary>], iteration_bounds = array<i64: 2, 1>, scalar_prefetch = 0 : i64, scratch_operands = 1 : i64, tpu.core_type = #tpu.core_type<tc>, window_params = [{transform_indices = @transform_0, window_bounds = array<i64: 1, 64, 64>}, {pipeline_mode = #tpu.pipeline_mode<synchronous>, transform_indices = @transform_1, window_bounds = array<i64: 128, 64>}, {pipeline_mode = #tpu.pipeline_mode<synchronous>, transform_indices = @transform_2, window_bounds = array<i64: 128, 1>}, {pipeline_mode = #tpu.pipeline_mode<synchronous>, transform_indices = @transform_3, window_bounds = array<i64: 8, 128>}, {pipeline_mode = #tpu.pipeline_mode<synchronous>, transform_indices = @transform_4, window_bounds = array<i64: 8, 1>}, {pipeline_mode = #tpu.pipeline_mode<synchronous>, transform_indices = @transform_5, window_bounds = array<i64: 128, 128>}, {pipeline_mode = #tpu.pipeline_mode<synchronous>, transform_indices = @transform_6, window_bounds = array<i64: 1, 128>}, {transform_indices = @transform_7, window_bounds = array<i64: 1, 8, 64>}, {transform_indices = @transform_8, window_bounds = array<i64: 1, 1, 128>}]} {
    %c0_i32 = arith.constant 0 : i32
    %0 = arith.cmpi eq, %arg1, %c0_i32 : i32
    %1 = arith.extui %0 : i1 to i32
    %c0_i32_0 = arith.constant 0 : i32
    %2 = arith.cmpi ne, %1, %c0_i32_0 : i32
    scf.if %2 {
      %cst_23 = arith.constant 0.000000e+00 : f32
      %30 = vector.broadcast %cst_23 : f32 to vector<128x1xf32>
      %c0_24 = arith.constant 0 : index
      %c0_25 = arith.constant 0 : index
      %31 = vector.load %arg11[%c0_24, %c0_25] : memref<128x1xf32, #tpu.memory_space<vmem>>, vector<128x1xf32>
      tpu.vector_store %arg11[%c0_24, %c0_25], %30 {strides = array<i32>} : memref<128x1xf32, #tpu.memory_space<vmem>>, vector<128x1xf32>,
    } else {
    }
    %c0 = arith.constant 0 : index
    %c0_1 = arith.constant 0 : index
    %3 = vector.load %arg3[%c0, %c0_1] : memref<128x64xbf16, #tpu.memory_space<vmem>>, vector<128x64xbf16>
    %c0_2 = arith.constant 0 : index
    %c0_3 = arith.constant 0 : index
    %c0_4 = arith.constant 0 : index
    %4 = vector.load %arg2[%c0_2, %c0_3, %c0_4] : memref<1x64x64xbf16, #tpu.memory_space<vmem>>, vector<1x64x64xbf16>
    %5 = vector.shape_cast %4 : vector<1x64x64xbf16> to vector<64x64xbf16>
    %cst = arith.constant dense<0.000000e+00> : vector<128x64xf32>
    %6 = tpu.matmul %3, %5, %cst {dimension_numbers = #tpu.dot_dimension_numbers<[1], [0], [0], [1], [0, 0, 1, 1], [], []>} : vector<128x64xbf16>, vector<64x64xbf16>, vector<128x64xf32> -> vector<128x64xf32>
    %c0_5 = arith.constant 0 : index
    %c0_6 = arith.constant 0 : index
    %7 = vector.load %arg4[%c0_5, %c0_6] : memref<128x1xf32, #tpu.memory_space<vmem>>, vector<128x1xf32>
    %8 = vector.broadcast %7 : vector<128x1xf32> to vector<128x64xf32>
    %9 = arith.addf %6, %8 : vector<128x64xf32>
    %cst_7 = arith.constant 0.000000e+00 : f32
    %10 = vector.broadcast %cst_7 : f32 to vector<128x64xf32>
    %11 = arith.maximumf %9, %10 : vector<128x64xf32>
    %c0_8 = arith.constant 0 : index
    %c0_9 = arith.constant 0 : index
    %12 = vector.load %arg5[%c0_8, %c0_9] : memref<8x128xbf16, #tpu.memory_space<vmem>>, vector<8x128xbf16>
    %13 = arith.truncf %11 : vector<128x64xf32> to vector<128x64xbf16>
    %cst_10 = arith.constant dense<0.000000e+00> : vector<8x64xf32>
    %14 = tpu.matmul %12, %13, %cst_10 {dimension_numbers = #tpu.dot_dimension_numbers<[1], [0], [0], [1], [0, 0, 1, 1], [], []>} : vector<8x128xbf16>, vector<128x64xbf16>, vector<8x64xf32> -> vector<8x64xf32>
    %c0_11 = arith.constant 0 : index
    %c0_12 = arith.constant 0 : index
    %15 = vector.load %arg6[%c0_11, %c0_12] : memref<8x1xf32, #tpu.memory_space<vmem>>, vector<8x1xf32>
    %16 = vector.broadcast %15 : vector<8x1xf32> to vector<8x64xf32>
    %17 = arith.addf %14, %16 : vector<8x64xf32>
    %18 = arith.truncf %17 : vector<8x64xf32> to vector<8x64xbf16>
    %c0_13 = arith.constant 0 : index
    %c0_14 = arith.constant 0 : index
    %c0_15 = arith.constant 0 : index
    %19 = vector.load %arg9[%c0_13, %c0_14, %c0_15] : memref<1x8x64xbf16, #tpu.memory_space<vmem>>, vector<1x8x64xbf16>
    %20 = vector.shape_cast %19 : vector<1x8x64xbf16> to vector<8x64xbf16>
    %21 = vector.shape_cast %18 : vector<8x64xbf16> to vector<1x8x64xbf16>
    tpu.vector_store %arg9[%c0_13, %c0_14, %c0_15], %21 {strides = array<i32>} : memref<1x8x64xbf16, #tpu.memory_space<vmem>>, vector<1x8x64xbf16>,
    %c0_16 = arith.constant 0 : index
    %c0_17 = arith.constant 0 : index
    %22 = vector.load %arg11[%c0_16, %c0_17] : memref<128x1xf32, #tpu.memory_space<vmem>>, vector<128x1xf32>
    %cst_18 = arith.constant dense<0.000000e+00> : vector<128xf32>
    %23 = vector.multi_reduction <add>, %11, %cst_18 [1] : vector<128x64xf32> to vector<128xf32>
    %24 = vector.shape_cast %23 : vector<128xf32> to vector<128x1xf32>
    %25 = arith.addf %22, %24 : vector<128x1xf32>
    %c0_19 = arith.constant 0 : index
    %c0_20 = arith.constant 0 : index
    %26 = vector.load %arg11[%c0_19, %c0_20] : memref<128x1xf32, #tpu.memory_space<vmem>>, vector<128x1xf32>
    tpu.vector_store %arg11[%c0_19, %c0_20], %25 {strides = array<i32>} : memref<128x1xf32, #tpu.memory_space<vmem>>, vector<128x1xf32>,
    %c0_i32_21 = arith.constant 0 : i32
    %27 = arith.cmpi eq, %arg1, %c0_i32_21 : i32
    %28 = arith.extui %27 : i1 to i32
    %c0_i32_22 = arith.constant 0 : i32
    %29 = arith.cmpi ne, %28, %c0_i32_22 : i32
    scf.if %29 {
      %c0_23 = arith.constant 0 : index
      %c0_24 = arith.constant 0 : index
      %30 = vector.load %arg11[%c0_23, %c0_24] : memref<128x1xf32, #tpu.memory_space<vmem>>, vector<128x1xf32>
      %cst_25 = arith.constant 1.562500e-02 : f32
      %31 = vector.broadcast %cst_25 : f32 to vector<128x1xf32>
      %32 = arith.mulf %30, %31 : vector<128x1xf32>
      %c0_26 = arith.constant 0 : index
      %c0_27 = arith.constant 0 : index
      %33 = vector.load %arg7[%c0_26, %c0_27] : memref<128x128xf32, #tpu.memory_space<vmem>>, vector<128x128xf32>
      %34 = vector.broadcast %32 : vector<128x1xf32> to vector<128x128xf32>
      %35 = arith.mulf %33, %34 : vector<128x128xf32>
      %cst_28 = arith.constant dense<0.000000e+00> : vector<128xf32>
      %36 = vector.multi_reduction <add>, %35, %cst_28 [0] : vector<128x128xf32> to vector<128xf32>
      %37 = vector.shape_cast %36 : vector<128xf32> to vector<1x128xf32>
      %c0_29 = arith.constant 0 : index
      %c0_30 = arith.constant 0 : index
      %38 = vector.load %arg8[%c0_29, %c0_30] : memref<1x128xf32, #tpu.memory_space<vmem>>, vector<1x128xf32>
      %39 = arith.addf %37, %38 : vector<1x128xf32>
      %40 = tpu.iota {dimensions = array<i32: 1>} : vector<1x128xi32>
      %c1_i32 = arith.constant 1 : i32
      %41 = vector.broadcast %c1_i32 : i32 to vector<1x128xi32>
      %42 = arith.cmpi sge, %40, %41 : vector<1x128xi32>
      %c3_i32 = arith.constant 3 : i32
      %43 = vector.broadcast %c3_i32 : i32 to vector<1x128xi32>
      %44 = arith.cmpi slt, %40, %43 : vector<1x128xi32>
      %45 = arith.andi %42, %44 : vector<1x128xi1>
      %46 = arith.negf %39 : vector<1x128xf32>
      %47 = math.exp %46 : vector<1x128xf32>
      %cst_31 = arith.constant 1.000000e+00 : f32
      %48 = vector.broadcast %cst_31 : f32 to vector<1x128xf32>
      %49 = arith.addf %48, %47 : vector<1x128xf32>
      %50 = arith.divf %48, %49 : vector<1x128xf32>
      %51 = arith.select %45, %50, %39 : vector<1x128xi1>, vector<1x128xf32>
      %c0_32 = arith.constant 0 : index
      %c0_33 = arith.constant 0 : index
      %c0_34 = arith.constant 0 : index
      %52 = vector.load %arg10[%c0_32, %c0_33, %c0_34] : memref<1x1x128xf32, #tpu.memory_space<vmem>>, vector<1x1x128xf32>
      %53 = vector.shape_cast %52 : vector<1x1x128xf32> to vector<1x128xf32>
      %54 = vector.shape_cast %51 : vector<1x128xf32> to vector<1x1x128xf32>
      tpu.vector_store %arg10[%c0_32, %c0_33, %c0_34], %54 {strides = array<i32>} : memref<1x1x128xf32, #tpu.memory_space<vmem>>, vector<1x1x128xf32>,
    } else {
    }
    return
  }
  func.func @transform_0(%arg0: i32, %arg1: i32) -> (i32, i32, i32) {
    %c0_i32 = arith.constant 0 : i32
    %c0_i32_0 = arith.constant 0 : i32
    return %arg0, %c0_i32, %arg1 : i32, i32, i32
  }
  func.func @transform_1(%arg0: i32, %arg1: i32) -> (i32, i32) {
    %c0_i32 = arith.constant 0 : i32
    %c0_i32_0 = arith.constant 0 : i32
    %c0_i32_1 = arith.constant 0 : i32
    return %c0_i32, %c0_i32_0 : i32, i32
  }
  func.func @transform_2(%arg0: i32, %arg1: i32) -> (i32, i32) {
    %c0_i32 = arith.constant 0 : i32
    %c0_i32_0 = arith.constant 0 : i32
    %c0_i32_1 = arith.constant 0 : i32
    return %c0_i32, %c0_i32_0 : i32, i32
  }
  func.func @transform_3(%arg0: i32, %arg1: i32) -> (i32, i32) {
    %c0_i32 = arith.constant 0 : i32
    %c0_i32_0 = arith.constant 0 : i32
    %c0_i32_1 = arith.constant 0 : i32
    return %c0_i32, %c0_i32_0 : i32, i32
  }
  func.func @transform_4(%arg0: i32, %arg1: i32) -> (i32, i32) {
    %c0_i32 = arith.constant 0 : i32
    %c0_i32_0 = arith.constant 0 : i32
    %c0_i32_1 = arith.constant 0 : i32
    return %c0_i32, %c0_i32_0 : i32, i32
  }
  func.func @transform_5(%arg0: i32, %arg1: i32) -> (i32, i32) {
    %c0_i32 = arith.constant 0 : i32
    %c0_i32_0 = arith.constant 0 : i32
    %c0_i32_1 = arith.constant 0 : i32
    return %c0_i32, %c0_i32_0 : i32, i32
  }
  func.func @transform_6(%arg0: i32, %arg1: i32) -> (i32, i32) {
    %c0_i32 = arith.constant 0 : i32
    %c0_i32_0 = arith.constant 0 : i32
    %c0_i32_1 = arith.constant 0 : i32
    return %c0_i32, %c0_i32_0 : i32, i32
  }
  func.func @transform_7(%arg0: i32, %arg1: i32) -> (i32, i32, i32) {
    %c0_i32 = arith.constant 0 : i32
    %c0_i32_0 = arith.constant 0 : i32
    return %arg0, %c0_i32, %arg1 : i32, i32, i32
  }
  func.func @transform_8(%arg0: i32, %arg1: i32) -> (i32, i32, i32) {
    %c0_i32 = arith.constant 0 : i32
    %c0_i32_0 = arith.constant 0 : i32
    %c0_i32_1 = arith.constant 0 : i32
    return %arg0, %c0_i32, %c0_i32_0 : i32, i32, i32
  }
}

</mosaic_0001>

<bundles_post_ra>
// kernel: inference_model_forward.1
= control target key start
LH: loop header
LB: loop body
LE: loop exit
PB: predicated region body
PF: predicated region fallthrough
CT: control target
= control target key end

     0   :  { %s1342_s27 = smov 0   ;;  %s1344_s28 = smov 0   ;;  %s1596_s0 = inlined_call_operand.vmem [shape: bf16[2,64,64], index: 0, kind: input, shape index: {}]   ;;  %s1597_s1 = inlined_call_operand.vmem [shape: bf16[128,64], index: 1, kind: input, shape index: {}]   ;;  %s1598_s2 = inlined_call_operand.vmem [shape: f32[128,1], index: 2, kind: input, shape index: {}]   ;;  %s1599_s3 = inlined_call_operand.vmem [shape: bf16[8,128], index: 3, kind: input, shape index: {}]   ;;  %s1600_s4 = inlined_call_operand.vmem [shape: f32[8,1], index: 4, kind: input, shape index: {}]   ;;  %s1601_s5 = inlined_call_operand.vmem [shape: f32[128,128], index: 5, kind: input, shape index: {}]   ;;  %s1602_s6 = inlined_call_operand.vmem [shape: f32[1,128], index: 6, kind: input, shape index: {}]   ;;  %s1603_s7 = inlined_call_operand.vmem [shape: bf16[2,8,64], index: 7, kind: output, shape index: {0}]   ;;  %s1604_s8 = inlined_call_operand.vmem [shape: f32[2,1,128], index: 8, kind: output, shape index: {1}]  }
   0x1   :  { %s1346_s29 = smov 0  }
   0x2 LB: > { %s31_s30 = sadd.s32 1, %s1288_s28  ;;  %p1132_p0 = scmp.ge.s32.totalorder %s1292_s29, 1  ;;  %s1292_s29 = sphi %s1346_s29, %s19_s29   ;;  %s1288_s28 = sphi %s1344_s28, %s1606_s28   ;;  %s1284_s27 = sphi %s1342_s27, %s1605_s27  }
   0x3   : > { %p33_p1 = scmp.ge.s32.totalorder %s31_s30, 2  ;;  %p284_p2 = scmp.lt.s32.totalorder %s1292_s29, 3 }
   0x5   : > { %s1608_s30 = smov (%p33_p1, %s31_s30), 0  ;;  %p285_p3 = pnand %p1132_p0, %p284_p2 }
   0x6   : > { %p326_p4 = scmp.lt.s32.totalorder (!%p285_p3), %s1284_s27, 1  ;;  %v1258_v0 = vld [vmem:[%s1597_s1] sm:$0xff] (!%p285_p3)   ;;  %vm550_vm0 = vcmask (!%p285_p3), 523264   ;;  %v1294_v1 = vmov (!%p285_p3), 0   ;;  %v392_v6 = vld [vmem:[%s1598_s2 + $0x10] sm:$0xff] (!%p285_p3)  ;;  %v391_v8 = vld [vmem:[%s1598_s2 + $0x8] sm:$0xff] (!%p285_p3) }
   0x7   : > { %288 = sbr.rel (%p285_p3) target bundleno = 612 (0x264), region = 48  ;;  %1189 = vmatprep.mubr.msk.bf16.mxu0 (!%p285_p3), %vm550_vm0, %v1258_v0  ;;  %1252 = vset.pattern.permute.xlu0 (!%p285_p3), %v1294_v1  ;;  %v390_v5 = vld [vmem:[%s1598_s2] sm:$0xff] (!%p285_p3)  ;;  %v393_v9 = vld [vmem:[%s1598_s2 + $0x18] sm:$0xff] (!%p285_p3)  ;;  %v395_v11 = vld [vmem:[%s1598_s2 + $0x28] sm:$0xff] (!%p285_p3)  ;;  %v1295_v29 = vmov (!%p285_p3), 0.0   ;;  %vm1296_vm1 = vmmov (!%p285_p3), 0  }
   0x8   : > { %1253 = vset.pattern.permute.xlu1 (!%p285_p3), %v1294_v1  ;;  %408 = vperm.xlu0 (!%p285_p3), %1252, %v390_v5   ;;  %v394_v10 = vld [vmem:[%s1598_s2 + $0x20] sm:$0xff] (!%p285_p3)  ;;  %v1259_v12 = vld [vmem:[%s1597_s1 + $0x8] sm:$0xff] (!%p285_p3)   ;;  %v1260_v13 = vld [vmem:[%s1597_s1 + $0x10] sm:$0xff] (!%p285_p3)   ;;  %vm349_vm2 = vcmask (!%p285_p3), 7168   ;;  %vm744_vm3 = vcmask (!%p285_p3), 519168  }
   0x9   : > { %418 = vperm.xlu1 (!%p285_p3), %1253, %v392_v6   ;;  %v396_v14 = vld [vmem:[%s1598_s2 + $0x30] sm:$0xff] (!%p285_p3)  ;;  %v397_v15 = vld [vmem:[%s1598_s2 + $0x38] sm:$0xff] (!%p285_p3)  ;;  %v398_v16 = vld [vmem:[%s1598_s2 + $0x40] sm:$0xff] (!%p285_p3)  ;;  %1205 = vmatprep.subr.bf16.mxu1 (!%p285_p3), %v1295_v29  ;;  %350 = vst.msk [vmem:[#allocation2] sm:$0xff] (!%p285_p3), %vm349_vm2, %v1295_v29 }
   0xa   : > { %v399_v17 = vld [vmem:[%s1598_s2 + $0x48] sm:$0xff] (!%p285_p3)  ;;  %v1261_v18 = vld [vmem:[%s1597_s1 + $0x18] sm:$0xff] (!%p285_p3)   ;;  %v1262_v19 = vld [vmem:[%s1597_s1 + $0x20] sm:$0xff] (!%p285_p3)   ;;  %1221 = vmatprep.mubr.msk.bf16.mxu1 (!%p285_p3), %vm1296_vm1, %v1295_v29  ;;  %351 = vst.msk [vmem:[#allocation2 + $0x8] sm:$0xff] (!%p285_p3), %vm349_vm2, %v1295_v29 }
   0xb   : > { %v400_v20 = vld [vmem:[%s1598_s2 + $0x50] sm:$0xff] (!%p285_p3)  ;;  %v401_v21 = vld [vmem:[%s1598_s2 + $0x58] sm:$0xff] (!%p285_p3)  ;;  %v402_v22 = vld [vmem:[%s1598_s2 + $0x60] sm:$0xff] (!%p285_p3)  ;;  %352 = vst.msk [vmem:[#allocation2 + $0x10] sm:$0xff] (!%p285_p3), %vm349_vm2, %v1295_v29 }
   0xc   : > { %413 = vperm.xlu0 (!%p285_p3), %1252, %v391_v8   ;;  %v403_v23 = vld [vmem:[%s1598_s2 + $0x68] sm:$0xff] (!%p285_p3)  ;;  %v1264_v25 = vld [vmem:[%s1597_s1 + $0x30] sm:$0xff] (!%p285_p3)   ;;  %v405_v27 = vld [vmem:[%s1598_s2 + $0x78] sm:$0xff] (!%p285_p3)  ;;  %353 = vst.msk [vmem:[#allocation2 + $0x18] sm:$0xff] (!%p285_p3), %vm349_vm2, %v1295_v29 }
   0xd   : > { %423 = vperm.xlu1 (!%p285_p3), %1253, %v393_v9   ;;  %v1263_v24 = vld [vmem:[%s1597_s1 + $0x28] sm:$0xff] (!%p285_p3)   ;;  %v404_v26 = vld [vmem:[%s1598_s2 + $0x70] sm:$0xff] (!%p285_p3)  ;;  %v1265_v28 = vld [vmem:[%s1597_s1 + $0x38] sm:$0xff] (!%p285_p3)   ;;  %354 = vst.msk [vmem:[#allocation2 + $0x20] sm:$0xff] (!%p285_p3), %vm349_vm2, %v1295_v29 }
   0xe   : > { %s1610_s27 = smov (!%p326_p4, %s1284_s27), 1  ;;  %355 = vst.msk [vmem:[#allocation2 + $0x28] sm:$0xff] %vm349_vm2, %v1295_v29  ;;  %356 = vst.msk [vmem:[#allocation2 + $0x30] sm:$0xff] %vm349_vm2, %v1295_v29 }
   0xf   : > { %s1159_s11 = sshll.u32 %s1610_s27, 5  ;;  %357 = vst.msk [vmem:[#allocation2 + $0x38] sm:$0xff] %vm349_vm2, %v1295_v29  ;;  %358 = vst.msk [vmem:[#allocation2 + $0x40] sm:$0xff] %vm349_vm2, %v1295_v29  ;;  %s1135_s25 = sshll.u32 %s1610_s27, 2 }
  0x10   : > { %s333_s14 = scalar_lea.vmem %s1596_s0, %s1159_s11  ;;  %428 = vperm.xlu0 %1252, %v394_v10   ;;  %359 = vst.msk [vmem:[#allocation2 + $0x48] sm:$0xff] %vm349_vm2, %v1295_v29  ;;  %360 = vst.msk [vmem:[#allocation2 + $0x50] sm:$0xff] %vm349_vm2, %v1295_v29  ;;  %s340_s10 = scalar_lea.vmem %s1603_s7, %s1135_s25 }
  0x11   : > { %v1254_v2 = vld [vmem:[%s333_s14] sm:$0xff]   ;;  %v1255_v3 = vld [vmem:[%s333_s14 + $0x8] sm:$0xff]   ;;  %v1256_v4 = vld [vmem:[%s333_s14 + $0x10] sm:$0xff]   ;;  %433 = vperm.xlu1 %1253, %v395_v11   ;;  %361 = vst.msk [vmem:[#allocation2 + $0x58] sm:$0xff] %vm349_vm2, %v1295_v29  ;;  %s343_s15 = scalar_lea.vmem %s1604_s8, %s1610_s27 }
  0x12   : > { %1181 = vmatprep.subr.bf16.mxu0 %v1254_v2  ;;  %v1257_v7 = vld [vmem:[%s333_s14 + $0x18] sm:$0xff]   ;;  %362 = vst.msk [vmem:[#allocation2 + $0x60] sm:$0xff] %vm349_vm2, %v1295_v29  ;;  %363 = vst.msk [vmem:[#allocation2 + $0x68] sm:$0xff] %vm349_vm2, %v1295_v29 }
  0x13   : > { %1182 = vmatpush3.bf16.msra.mxu0 %v1254_v2  ;;  %364 = vst.msk [vmem:[#allocation2 + $0x70] sm:$0xff] %vm349_vm2, %v1295_v29  ;;  %365 = vst.msk [vmem:[#allocation2 + $0x78] sm:$0xff] %vm349_vm2, %v1295_v29 }
  0x14   : > { %1183 = vmatprep.subr.bf16.mxu0 %v1255_v3  ;;  %438 = vperm.xlu0 %1252, %v396_v14  }
  0x15   : > { %443 = vperm.xlu1 %1253, %v397_v15  }
  0x17   : > { %1184 = vmatpush3.bf16.msra.mxu0 %v1255_v3 }
  0x18   : > { %1185 = vmatprep.subr.bf16.mxu0 %v1256_v4  ;;  %448 = vperm.xlu0 %1252, %v398_v16  }
  0x19   : > { %453 = vperm.xlu1 %1253, %v399_v17  }
  0x1b   : > { %1186 = vmatpush3.bf16.msra.mxu0 %v1256_v4 }
  0x1c   : > { %1187 = vmatprep.subr.bf16.mxu0 %v1257_v7  ;;  %458 = vperm.xlu0 %1252, %v400_v20  }
  0x1d   : > { %463 = vperm.xlu1 %1253, %v401_v21  }
  0x1f   : > { %1188 = vmatpush3.bf16.msra.mxu0 %v1257_v7 }
  0x20   : > { %468 = vperm.xlu0 %1252, %v402_v22  }
  0x21   : > { %473 = vperm.xlu1 %1253, %v403_v23  }
  0x22   : > { %1190 = vmatmul.mubr.msk.bf16.vlgmr.msra.gmra.mrb[0].mxu0 %vm550_vm0, %v1259_v12 }
  0x23   : > { %1193 = vmatprep.mubr.msk.bf16.mxu0 %vm550_vm0, %v1260_v13 }
  0x24   : > { %478 = vperm.xlu0 %1252, %v404_v26  }
  0x25   : > { %483 = vperm.xlu1 %1253, %v405_v27  }
  0x2a   : > { %1194 = vmatmul.mubr.msk.bf16.gmra.mrb[4].mxu0 %vm550_vm0, %v1261_v18 }
  0x2b   : > { %1197 = vmatprep.mubr.msk.bf16.mxu0 %vm550_vm0, %v1262_v19 }
  0x32   : > { %1198 = vmatmul.mubr.msk.bf16.gmra.mrb[8].mxu0 %vm550_vm0, %v1263_v24 }
  0x33   : > { %1201 = vmatprep.mubr.msk.bf16.mxu0 %vm550_vm0, %v1264_v25 }
  0x3a   : > { %1202 = vmatmul.mubr.msk.bf16.gmra.mrb[12].mxu0 %vm550_vm0, %v1265_v28 }
  0x87   : > { %v409_v30 = vpop.permute.xlu0 %408 }
  0x88   : > { %v419_v31 = vpop.permute.xlu1 %418 }
  0x8b   : > { %v414_v32 = vpop.permute.xlu0 %413 }
  0x8c   : > { %v424_v33 = vpop.permute.xlu1 %423 }
  0x8f   : > { %v429_v34 = vpop.permute.xlu0 %428 }
  0x90   : > { %v434_v35 = vpop.permute.xlu1 %433 }
  0x93   : > { %v439_v36 = vpop.permute.xlu0 %438 }
  0x94   : > { %v444_v40 = vpop.permute.xlu1 %443 }
  0x97   : > { %v449_v49 = vpop.permute.xlu0 %448 }
  0x98   : > { %v454_v53 = vpop.permute.xlu1 %453 }
  0x9b   : > { %v459_v0 = vpop.permute.xlu0 %458 }
  0x9c   : > { %v464_v5 = vpop.permute.xlu1 %463 }
  0x9f   : > { %v469_v14 = vpop.permute.xlu0 %468 }
  0xa0   : > { %v474_v21 = vpop.permute.xlu1 %473 }
  0xf5   : > { %v1191_v37 = vpop.f32.mrb[0].mxu0 }
  0xf6   : > { %v618_v38 = vadd.f32 %v1191_v37, %v419_v31  ;;  %v609_v39 = vpop.f32.mrb[1].mxu0  ;;  %v479_v31 = vpop.permute.xlu0 %478 }
  0xf7   : > { %v610_v41 = vadd.f32 %v609_v39, %v409_v30  ;;  %v1192_v42 = vpop.f32.mrb[2].mxu0 }
  0xf8   : > { %v621_v43 = vadd.f32 %v1192_v42, %v424_v33  ;;  %v612_v44 = vpop.f32.mrb[3].mxu0  ;;  %v674_v47 = vmax.f32 %v618_v38, 0.0 }
  0xf9   : > { %v672_v45 = vmax.f32 %v610_v41, 0.0  ;;  %v613_v46 = vadd.f32 %v612_v44, %v414_v32 }
  0xfa   : > { %v675_v48 = vmax.f32 %v621_v43, 0.0  ;;  %v768_v61 = vsel %vm550_vm0, %v674_v47, 0.0 }
  0xfb   : > { %v673_v50 = vmax.f32 %v613_v46, 0.0  ;;  %v762_v51 = vsel %vm550_vm0, %v672_v45, 0.0 }
  0xfc   : > { %v690_v52 = vpack.c.bf16 %v675_v48, %v674_v47  ;;  %763 = vadd.xlane.f32.xlu0 %v762_v51  ;;  %v771_v8 = vsel %vm550_vm0, %v675_v48, 0.0 }
  0xfd   : > { %v1195_v54 = vpop.f32.mrb[4].mxu0  ;;  %v765_v55 = vsel %vm550_vm0, %v673_v50, 0.0  ;;  %v689_v56 = vpack.c.bf16 %v673_v50, %v672_v45 }
  0xfe   : > { %v634_v57 = vadd.f32 %v1195_v54, %v439_v36  ;;  %v625_v58 = vpop.f32.mrb[5].mxu0  ;;  %766 = vadd.xlane.f32.xlu1 %v765_v55  ;;  %v484_v36 = vpop.permute.xlu1 %483  ;;  %v688_v55 = vld [vmem:[%s1599_s3] sm:$0xf] }
  0xff   : > { %v626_v59 = vadd.f32 %v625_v58, %v429_v34  ;;  %v1196_v60 = vpop.f32.mrb[6].mxu0  ;;  %1206 = vmatpush3.bf16.msra.mxu1 %v689_v56  ;;  %v746_v56 = vld [vmem:[#allocation2] sm:$0xff]  ;;  %v747_v58 = vld [vmem:[#allocation2 + $0x8] sm:$0xff] }
 0x100   : > { %v637_v62 = vadd.f32 %v1196_v60, %v444_v40  ;;  %v628_v63 = vpop.f32.mrb[7].mxu0  ;;  %769 = vadd.xlane.f32.xlu0 %v768_v61  ;;  %1207 = vmatprep.subr.bf16.mxu1 %v1295_v29  ;;  %v678_v3 = vmax.f32 %v634_v57, 0.0  ;;  %v748_v61 = vld [vmem:[#allocation2 + $0x10] sm:$0xff] }
 0x101   : > { %v676_v1 = vmax.f32 %v626_v59, 0.0  ;;  %v629_v2 = vadd.f32 %v628_v63, %v434_v35 }
 0x102   : > { %v679_v4 = vmax.f32 %v637_v62, 0.0  ;;  %v780_v17 = vsel %vm550_vm0, %v678_v3, 0.0 }
 0x103   : > { %v677_v6 = vmax.f32 %v629_v2, 0.0  ;;  %1208 = vmatpush3.bf16.msra.mxu1 %v690_v52  ;;  %v774_v7 = vsel %vm550_vm0, %v676_v1, 0.0 }
 0x104   : > { %v692_v9 = vpack.c.bf16 %v679_v4, %v678_v3  ;;  %775 = vadd.xlane.f32.xlu1 %v774_v7  ;;  %772 = vadd.xlane.f32.xlu0 %v771_v8  ;;  %v783_v28 = vsel %vm550_vm0, %v679_v4, 0.0  ;;  %v751_v7 = vld [vmem:[#allocation2 + $0x28] sm:$0xff] }
 0x105   : > { %v691_v10 = vpack.c.bf16 %v677_v6, %v676_v1  ;;  %v1199_v11 = vpop.f32.mrb[8].mxu0  ;;  %1209 = vmatprep.subr.bf16.mxu1 %v1295_v29  ;;  %v777_v18 = vsel %vm550_vm0, %v677_v6, 0.0  ;;  %v749_v1 = vld [vmem:[#allocation2 + $0x18] sm:$0xff]  ;;  %v752_v6 = vld [vmem:[#allocation2 + $0x30] sm:$0xff] }
 0x106   : > { %v650_v12 = vadd.f32 %v1199_v11, %v459_v0  ;;  %v641_v13 = vpop.f32.mrb[9].mxu0  ;;  %v750_v0 = vld [vmem:[#allocation2 + $0x20] sm:$0xff] }
 0x107   : > { %v642_v15 = vadd.f32 %v641_v13, %v449_v49  ;;  %v1200_v16 = vpop.f32.mrb[10].mxu0  ;;  %1210 = vmatpush3.bf16.msra.mxu1 %v691_v10 }
 0x108   : > { %v653_v19 = vadd.f32 %v1200_v16, %v464_v5  ;;  %v644_v20 = vpop.f32.mrb[11].mxu0  ;;  %781 = vadd.xlane.f32.xlu1 %v780_v17  ;;  %778 = vadd.xlane.f32.xlu0 %v777_v18  ;;  %v682_v24 = vmax.f32 %v650_v12, 0.0  ;;  %v754_v16 = vld [vmem:[#allocation2 + $0x40] sm:$0xff]  ;;  %v753_v17 = vld [vmem:[#allocation2 + $0x38] sm:$0xff] }
 0x109   : > { %v680_v22 = vmax.f32 %v642_v15, 0.0  ;;  %v645_v23 = vadd.f32 %v644_v20, %v454_v53  ;;  %1211 = vmatprep.subr.bf16.mxu1 %v1295_v29 }
 0x10a   : > { %v683_v25 = vmax.f32 %v653_v19, 0.0  ;;  %v792_v39 = vsel %vm550_vm0, %v682_v24, 0.0 }
 0x10b   : > { %v681_v26 = vmax.f32 %v645_v23, 0.0  ;;  %1212 = vmatpush3.bf16.msra.mxu1 %v692_v9  ;;  %v786_v27 = vsel %vm550_vm0, %v680_v22, 0.0 }
 0x10c   : > { %v694_v30 = vpack.c.bf16 %v683_v25, %v682_v24  ;;  %787 = vadd.xlane.f32.xlu1 %v786_v27  ;;  %784 = vadd.xlane.f32.xlu0 %v783_v28  ;;  %v795_v49 = vsel %vm550_vm0, %v683_v25, 0.0  ;;  %v756_v24 = vld [vmem:[#allocation2 + $0x50] sm:$0xff]  ;;  %v755_v25 = vld [vmem:[#allocation2 + $0x48] sm:$0xff] }
 0x10d   : > { %v693_v32 = vpack.c.bf16 %v681_v26, %v680_v22  ;;  %v1203_v33 = vpop.f32.mrb[12].mxu0  ;;  %1213 = vmatprep.subr.bf16.mxu1 %v1295_v29  ;;  %v789_v40 = vsel %vm550_vm0, %v681_v26, 0.0 }
 0x10e   : > { %v666_v34 = vadd.f32 %v1203_v33, %v479_v31  ;;  %v657_v35 = vpop.f32.mrb[13].mxu0 }
 0x10f   : > { %v658_v37 = vadd.f32 %v657_v35, %v469_v14  ;;  %v1204_v38 = vpop.f32.mrb[14].mxu0  ;;  %1214 = vmatpush3.bf16.msra.mxu1 %v693_v32  ;;  %v758_v35 = vld [vmem:[#allocation2 + $0x60] sm:$0xff] }
 0x110   : > { %v669_v41 = vadd.f32 %v1204_v38, %v484_v36  ;;  %v660_v42 = vpop.f32.mrb[15].mxu0  ;;  %793 = vadd.xlane.f32.xlu1 %v792_v39  ;;  %790 = vadd.xlane.f32.xlu0 %v789_v40  ;;  %v686_v45 = vmax.f32 %v666_v34, 0.0  ;;  %v757_v36 = vld [vmem:[#allocation2 + $0x58] sm:$0xff] }
 0x111   : > { %v684_v43 = vmax.f32 %v658_v37, 0.0  ;;  %v661_v44 = vadd.f32 %v660_v42, %v474_v21  ;;  %1215 = vmatprep.subr.bf16.mxu1 %v1295_v29 }
 0x112   : > { %v687_v46 = vmax.f32 %v669_v41, 0.0  ;;  %v804_v52 = vsel %vm550_vm0, %v686_v45, 0.0 }
 0x113   : > { %v685_v47 = vmax.f32 %v661_v44, 0.0  ;;  %1216 = vmatpush3.bf16.msra.mxu1 %v694_v30  ;;  %v798_v48 = vsel %vm550_vm0, %v684_v43, 0.0 }
 0x114   : > { %v696_v50 = vpack.c.bf16 %v687_v46, %v686_v45  ;;  %799 = vadd.xlane.f32.xlu1 %v798_v48  ;;  %796 = vadd.xlane.f32.xlu0 %v795_v49  ;;  %v807_v54 = vsel %vm550_vm0, %v687_v46, 0.0  ;;  %v760_v45 = vld [vmem:[#allocation2 + $0x70] sm:$0xff]  ;;  %v759_v46 = vld [vmem:[#allocation2 + $0x68] sm:$0xff] }
 0x115   : > { %v695_v51 = vpack.c.bf16 %v685_v47, %v684_v43  ;;  %1217 = vmatprep.subr.bf16.mxu1 %v1295_v29  ;;  %v801_v53 = vsel %vm550_vm0, %v685_v47, 0.0 }
 0x117   : > { %1218 = vmatpush3.bf16.msra.mxu1 %v695_v51 }
 0x118   : > { %805 = vadd.xlane.f32.xlu1 %v804_v52  ;;  %802 = vadd.xlane.f32.xlu0 %v801_v53 }
 0x119   : > { %1219 = vmatprep.subr.bf16.mxu1 %v1295_v29 }
 0x11b   : > { %1220 = vmatpush3.bf16.msra.mxu1 %v696_v50 }
 0x11c   : > { %808 = vadd.xlane.f32.xlu0 %v807_v54 }
 0x11e   : > { %1222 = vmatmul.mubr.bf16.vlgmr.msra.gmra.mrb[0].mxu1 %v688_v55  ;;  %v761_v55 = vld [vmem:[#allocation2 + $0x78] sm:$0xff] }
 0x189   : > { %v764_v57 = vpop.xlane.xlu0 %763 }
 0x18a   : > { %v810_v59 = vadd.f32 %v764_v57, %v746_v56 }
 0x18b   : > { %v767_v60 = vpop.xlane.xlu1 %766 }
 0x18c   : > { %827 = vst.msk [vmem:[#allocation2] sm:$0xff] %vm349_vm2, %v810_v59  ;;  %v811_v62 = vadd.f32 %v767_v60, %v747_v58 }
 0x18d   : > { %v770_v63 = vpop.xlane.xlu0 %769 }
 0x18e   : > { %828 = vst.msk [vmem:[#allocation2 + $0x8] sm:$0xff] %vm349_vm2, %v811_v62  ;;  %v812_v29 = vadd.f32 %v770_v63, %v748_v61 }
 0x190   : > { %829 = vst.msk [vmem:[#allocation2 + $0x10] sm:$0xff] %vm349_vm2, %v812_v29 }
 0x191   : > { %v776_v2 = vpop.xlane.xlu1 %775  ;;  %v773_v3 = vpop.xlane.xlu0 %772 }
 0x192   : > { %v814_v4 = vadd.f32 %v776_v2, %v750_v0  ;;  %v813_v5 = vadd.f32 %v773_v3, %v749_v1 }
 0x193   : > { %v846_v8 = vld [vmem:[#allocation2] sm:$0xff] }
 0x194   : > { %831 = vst.msk [vmem:[#allocation2 + $0x20] sm:$0xff] %vm349_vm2, %v814_v4  ;;  %830 = vst.msk [vmem:[#allocation2 + $0x18] sm:$0xff] %vm349_vm2, %v813_v5  ;;  %v862_v9 = vmul.f32 0.015625, %v846_v8  ;;  %v697_v5 = vld [vmem:[%s1600_s4] sm:$0xff] }
 0x195   : > { %v782_v10 = vpop.xlane.xlu1 %781  ;;  %v779_v11 = vpop.xlane.xlu0 %778  ;;  %v847_v12 = vld [vmem:[#allocation2 + $0x8] sm:$0xff] }
 0x196   : > { %v816_v13 = vadd.f32 %v782_v10, %v752_v6  ;;  %v815_v14 = vadd.f32 %v779_v11, %v751_v7  ;;  %896 = vperm.xlu1 %1253, %v862_v9   ;;  %v863_v15 = vmul.f32 0.015625, %v847_v12  ;;  %v878_v12 = vld [vmem:[%s1601_s5] sm:$0xff] }
 0x197   : > { %v848_v18 = vld [vmem:[#allocation2 + $0x10] sm:$0xff] }
 0x198   : > { %833 = vst.msk [vmem:[#allocation2 + $0x30] sm:$0xff] %vm349_vm2, %v816_v13  ;;  %832 = vst.msk [vmem:[#allocation2 + $0x28] sm:$0xff] %vm349_vm2, %v815_v14  ;;  %901 = vperm.xlu0 %1252, %v863_v15   ;;  %v864_v19 = vmul.f32 0.015625, %v848_v18  ;;  %v879_v14 = vld [vmem:[%s1601_s5 + $0x8] sm:$0xff] }
 0x199   : > { %v788_v20 = vpop.xlane.xlu1 %787  ;;  %v785_v21 = vpop.xlane.xlu0 %784 }
 0x19a   : > { %v818_v22 = vadd.f32 %v788_v20, %v754_v16  ;;  %v817_v23 = vadd.f32 %v785_v21, %v753_v17  ;;  %906 = vperm.xlu1 %1253, %v864_v19   ;;  %v880_v16 = vld [vmem:[%s1601_s5 + $0x10] sm:$0xff] }
 0x19b   : > { %v850_v26 = vld [vmem:[#allocation2 + $0x20] sm:$0xff]  ;;  %v849_v27 = vld [vmem:[#allocation2 + $0x18] sm:$0xff] }
 0x19c   : > { %835 = vst.msk [vmem:[#allocation2 + $0x40] sm:$0xff] %vm349_vm2, %v818_v22  ;;  %834 = vst.msk [vmem:[#allocation2 + $0x38] sm:$0xff] %vm349_vm2, %v817_v23  ;;  %v866_v28 = vmul.f32 0.015625, %v850_v26  ;;  %v865_v30 = vmul.f32 0.015625, %v849_v27  ;;  %v881_v22 = vld [vmem:[%s1601_s5 + $0x18] sm:$0xff] }
 0x19d   : > { %v794_v31 = vpop.xlane.xlu1 %793  ;;  %v791_v32 = vpop.xlane.xlu0 %790 }
 0x19e   : > { %v820_v33 = vadd.f32 %v794_v31, %v756_v24  ;;  %v819_v34 = vadd.f32 %v791_v32, %v755_v25  ;;  %916 = vperm.xlu0 %1252, %v866_v28   ;;  %911 = vperm.xlu1 %1253, %v865_v30   ;;  %v882_v24 = vld [vmem:[%s1601_s5 + $0x20] sm:$0xff]  ;;  %v883_v28 = vld [vmem:[%s1601_s5 + $0x28] sm:$0xff] }
 0x19f   : > { %v852_v37 = vld [vmem:[#allocation2 + $0x30] sm:$0xff]  ;;  %v851_v38 = vld [vmem:[#allocation2 + $0x28] sm:$0xff] }
 0x1a0   : > { %837 = vst.msk [vmem:[#allocation2 + $0x50] sm:$0xff] %vm349_vm2, %v820_v33  ;;  %836 = vst.msk [vmem:[#allocation2 + $0x48] sm:$0xff] %vm349_vm2, %v819_v34  ;;  %v868_v39 = vmul.f32 0.015625, %v852_v37  ;;  %v867_v40 = vmul.f32 0.015625, %v851_v38  ;;  %v884_v33 = vld [vmem:[%s1601_s5 + $0x30] sm:$0xff]  ;;  %v885_v37 = vld [vmem:[%s1601_s5 + $0x38] sm:$0xff] }
 0x1a1   : > { %v800_v41 = vpop.xlane.xlu1 %799  ;;  %v797_v42 = vpop.xlane.xlu0 %796 }
 0x1a2   : > { %v822_v43 = vadd.f32 %v800_v41, %v758_v35  ;;  %v821_v44 = vadd.f32 %v797_v42, %v757_v36  ;;  %926 = vperm.xlu0 %1252, %v868_v39   ;;  %921 = vperm.xlu1 %1253, %v867_v40   ;;  %v886_v41 = vld [vmem:[%s1601_s5 + $0x40] sm:$0xff] }
 0x1a3   : > { %v854_v47 = vld [vmem:[#allocation2 + $0x40] sm:$0xff]  ;;  %v853_v48 = vld [vmem:[#allocation2 + $0x38] sm:$0xff] }
 0x1a4   : > { %839 = vst.msk [vmem:[#allocation2 + $0x60] sm:$0xff] %vm349_vm2, %v822_v43  ;;  %838 = vst.msk [vmem:[#allocation2 + $0x58] sm:$0xff] %vm349_vm2, %v821_v44  ;;  %v870_v49 = vmul.f32 0.015625, %v854_v47  ;;  %v869_v50 = vmul.f32 0.015625, %v853_v48 }
 0x1a5   : > { %v806_v51 = vpop.xlane.xlu1 %805  ;;  %v803_v52 = vpop.xlane.xlu0 %802 }
 0x1a6   : > { %v824_v53 = vadd.f32 %v806_v51, %v760_v45  ;;  %v823_v54 = vadd.f32 %v803_v52, %v759_v46  ;;  %936 = vperm.xlu0 %1252, %v870_v49   ;;  %931 = vperm.xlu1 %1253, %v869_v50   ;;  %v887_v45 = vld [vmem:[%s1601_s5 + $0x48] sm:$0xff]  ;;  %v888_v49 = vld [vmem:[%s1601_s5 + $0x50] sm:$0xff] }
 0x1a7   : > { %v856_v56 = vld [vmem:[#allocation2 + $0x50] sm:$0xff]  ;;  %v855_v57 = vld [vmem:[#allocation2 + $0x48] sm:$0xff] }
 0x1a8   : > { %841 = vst.msk [vmem:[#allocation2 + $0x70] sm:$0xff] %vm349_vm2, %v824_v53  ;;  %840 = vst.msk [vmem:[#allocation2 + $0x68] sm:$0xff] %vm349_vm2, %v823_v54  ;;  %v872_v58 = vmul.f32 0.015625, %v856_v56  ;;  %v871_v59 = vmul.f32 0.015625, %v855_v57  ;;  %v889_v53 = vld [vmem:[%s1601_s5 + $0x58] sm:$0xff]  ;;  %v890_v57 = vld [vmem:[%s1601_s5 + $0x60] sm:$0xff] }
 0x1a9   : > { %v809_v60 = vpop.xlane.xlu0 %808 }
 0x1aa   : > { %v825_v61 = vadd.f32 %v809_v60, %v761_v55  ;;  %946 = vperm.xlu0 %1252, %v872_v58   ;;  %941 = vperm.xlu1 %1253, %v871_v59  }
 0x1ab   : > { %v858_v62 = vld [vmem:[#allocation2 + $0x60] sm:$0xff]  ;;  %v857_v63 = vld [vmem:[#allocation2 + $0x58] sm:$0xff] }
 0x1ac   : > { %842 = vst.msk [vmem:[#allocation2 + $0x78] sm:$0xff] %vm349_vm2, %v825_v61  ;;  %v874_v29 = vmul.f32 0.015625, %v858_v62  ;;  %v873_v0 = vmul.f32 0.015625, %v857_v63  ;;  %v891_v61 = vld [vmem:[%s1601_s5 + $0x68] sm:$0xff] }
 0x1ae   : > { %956 = vperm.xlu0 %1252, %v874_v29   ;;  %951 = vperm.xlu1 %1253, %v873_v0   ;;  %v892_v0 = vld [vmem:[%s1601_s5 + $0x70] sm:$0xff] }
 0x1af   : > { %v860_v1 = vld [vmem:[#allocation2 + $0x70] sm:$0xff]  ;;  %v859_v2 = vld [vmem:[#allocation2 + $0x68] sm:$0xff] }
 0x1b0   : > { %v876_v3 = vmul.f32 0.015625, %v860_v1  ;;  %v875_v4 = vmul.f32 0.015625, %v859_v2 }
 0x1b2   : > { %966 = vperm.xlu0 %1252, %v876_v3   ;;  %961 = vperm.xlu1 %1253, %v875_v4   ;;  %v893_v4 = vld [vmem:[%s1601_s5 + $0x78] sm:$0xff] }
 0x1b3   : > { %v861_v6 = vld [vmem:[#allocation2 + $0x78] sm:$0xff] }
 0x1b4   : > { %v877_v7 = vmul.f32 0.015625, %v861_v6 }
 0x1b6   : > { %700 = vperm.xlu0 %1252, %v697_v5   ;;  %971 = vperm.xlu1 %1253, %v877_v7  }
 0x1f1   : > { %v1525_v8 = vpop.f32.mrb[0].mxu1 }
 0x1f2   : > { %v1223_v9 = vpop.f32.mrb[1].mxu1 }
 0x1f3   : > { %v740_v10 = vpop.f32.mrb[2].mxu1 }
 0x1f4   : > { %v1224_v11 = vpop.f32.mrb[3].mxu1 }
 0x215   : > { %v897_v13 = vpop.permute.xlu1 %896 }
 0x216   : > { %v974_v17 = vmul.f32 %v897_v13, %v878_v12 }
 0x217   : > { %v902_v15 = vpop.permute.xlu0 %901 }
 0x218   : > { %v975_v18 = vmul.f32 %v902_v15, %v879_v14 }
 0x219   : > { %v907_v19 = vpop.permute.xlu1 %906 }
 0x21a   : > { %v990_v20 = vadd.f32 %v975_v18, %v974_v17  ;;  %v976_v21 = vmul.f32 %v907_v19, %v880_v16 }
 0x21c   : > { %v991_v26 = vadd.f32 %v990_v20, %v976_v21  ;;  %v1011_v20 = vld [vmem:[%s1602_s6] sm:$0x1] }
 0x21d   : > { %v912_v23 = vpop.permute.xlu1 %911  ;;  %v917_v25 = vpop.permute.xlu0 %916 }
 0x21e   : > { %v977_v27 = vmul.f32 %v912_v23, %v881_v22  ;;  %v978_v31 = vmul.f32 %v917_v25, %v882_v24  ;;  %v1013_v24 = vlaneseq }
 0x220   : > { %v992_v30 = vadd.f32 %v991_v26, %v977_v27  ;;  %v1014_v26 = vand.u32 127, %v1013_v24 }
 0x221   : > { %v922_v32 = vpop.permute.xlu1 %921  ;;  %v927_v34 = vpop.permute.xlu0 %926 }
 0x222   : > { %v993_v35 = vadd.f32 %v992_v30, %v978_v31  ;;  %v979_v36 = vmul.f32 %v922_v32, %v883_v28  ;;  %v980_v39 = vmul.f32 %v927_v34, %v884_v33  ;;  %vm1015_vm4 = vcmp.ge.s32.totalorder %v1014_v26, 1 }
 0x223   : > { %vm1016_vm5 = vcmp.lt.s32.totalorder %v1014_v26, 3 }
 0x224   : > { %v994_v38 = vadd.f32 %v993_v35, %v979_v36  ;;  %vm1017_vm6 = vmand %vm1015_vm4, %vm1016_vm5 }
 0x225   : > { %v932_v40 = vpop.permute.xlu1 %931  ;;  %v937_v42 = vpop.permute.xlu0 %936 }
 0x226   : > { %v995_v43 = vadd.f32 %v994_v38, %v980_v39  ;;  %v981_v44 = vmul.f32 %v932_v40, %v885_v37  ;;  %v982_v47 = vmul.f32 %v937_v42, %v886_v41 }
 0x228   : > { %v996_v46 = vadd.f32 %v995_v43, %v981_v44 }
 0x229   : > { %v942_v48 = vpop.permute.xlu1 %941  ;;  %v947_v50 = vpop.permute.xlu0 %946 }
 0x22a   : > { %v997_v51 = vadd.f32 %v996_v46, %v982_v47  ;;  %v983_v52 = vmul.f32 %v942_v48, %v887_v45  ;;  %v984_v55 = vmul.f32 %v947_v50, %v888_v49 }
 0x22c   : > { %v998_v54 = vadd.f32 %v997_v51, %v983_v52 }
 0x22d   : > { %v952_v56 = vpop.permute.xlu1 %951  ;;  %v957_v58 = vpop.permute.xlu0 %956 }
 0x22e   : > { %v999_v59 = vadd.f32 %v998_v54, %v984_v55  ;;  %v985_v60 = vmul.f32 %v952_v56, %v889_v53  ;;  %v986_v63 = vmul.f32 %v957_v58, %v890_v57 }
 0x230   : > { %v1000_v62 = vadd.f32 %v999_v59, %v985_v60 }
 0x231   : > { %v962_v29 = vpop.permute.xlu1 %961  ;;  %v967_v1 = vpop.permute.xlu0 %966 }
 0x232   : > { %v1001_v2 = vadd.f32 %v1000_v62, %v986_v63  ;;  %v987_v3 = vmul.f32 %v962_v29, %v891_v61  ;;  %v988_v6 = vmul.f32 %v967_v1, %v892_v0 }
 0x234   : > { %v1002_v5 = vadd.f32 %v1001_v2, %v987_v3 }
 0x235   : > { %v972_v7 = vpop.permute.xlu1 %971  ;;  %v701_v9 = vpop.permute.xlu0 %700 }
 0x236   : > { %v1003_v10 = vadd.f32 %v1002_v5, %v988_v6  ;;  %v989_v11 = vmul.f32 %v972_v7, %v893_v4  ;;  %v738_v12 = vadd.f32 %v1525_v8, %v701_v9 }
 0x238   : > { %v1004_v13 = vadd.f32 %v1003_v10, %v989_v11  ;;  %v743_v14 = vpack.c.bf16 %v738_v12, %v738_v12 }
 0x23a   : > { %v1005_v15 = vrot.slane %v1004_v13, 4  ;;  %745 = vst.msk [vmem:[%s340_s10] sm:$0xf] %vm744_vm3, %v743_v14 }
 0x23c   : > { %v1006_v16 = vadd.f32 %v1005_v15, %v1004_v13 }
 0x23e   : > { %v1007_v17 = vrot.slane %v1006_v16, 2 }
 0x240   : > { %v1008_v18 = vadd.f32 %v1007_v17, %v1006_v16 }
 0x242   : > { %v1009_v19 = vrot.slane %v1008_v18, 1 }
 0x244   : > { %v1010_v21 = vadd.f32 %v1009_v19, %v1008_v18 }
 0x246   : > { %v1012_v8 = vadd.f32 %v1011_v20, %v1010_v21 }
 0x248   : > { %v1156_v22 = vmul.f32 -1.442695, %v1012_v8 }
 0x24a   : > { %1266 = vpow2.f32 %v1156_v22 }
 0x254   : > { %v1267_v23 = vpop.eup %1266 }
 0x255   : > { %v1021_v25 = vadd.f32 1.0, %v1267_v23 }
 0x257   : > { %1268 = vrcp.f32 %v1021_v25 }
 0x261   : > { %v1269_v27 = vpop.eup %1268 }
 0x262   : > { %v1024_v28 = vsel %vm1017_vm6, %v1269_v27, %v1012_v8 }
 0x263   : > { %1025 = vst [vmem:[%s343_s15] sm:$0x1] %v1024_v28 }
 0x264 PF: > { %s19_s29 = sadd.s32 1, %s1292_s29   ;;  %s1605_s27 = smov %s1288_s28 }
 0x265   : > { %p16_p5 = scmp.ge.s32.totalorder %s19_s29, 4   ;;  %s1606_s28 = smov %s1608_s30 }
 0x267   :  { %18 = sbr.rel (!%p16_p5) target bundleno = 2 (0x2), region = 98 }

</bundles_post_ra>
